<compile_context>
chip_gen: v5e
topology: v5e:2x2
jax: 0.10.0
libtpu: 0.0.40
codegen_flags: <defaults>
</compile_context>

<pallas_src>
import jax
import jax.numpy as jnp
from jax.experimental import pallas as pl
from jax.experimental.pallas import tpu as pltpu

INPUT_SIZE = 784
HIDDEN_SIZE = 20
HIDDEN_SIZE2 = 10
NUM_CLASSES = 10

DEFAULT_BLOCK_BATCH = 1024  # rows of x per grid step (multiple of 8)


def mlp_kernel(x_ref, w1_ref, b1_ref, w2_ref, b2_ref, w3_ref, b3_ref, o_ref):
    # fc1 + ReLU  (bf16 x bf16 -> f32 accumulate on the MXU)
    h1 = jnp.dot(x_ref[...], w1_ref[...], preferred_element_type=jnp.float32)
    h1 = jnp.maximum(h1 + b1_ref[...], 0.0)
    # fc2 + ReLU
    h2 = jnp.dot(h1.astype(jnp.bfloat16), w2_ref[...],
                 preferred_element_type=jnp.float32)
    h2 = jnp.maximum(h2 + b2_ref[...], 0.0)
    # fc3 (no activation)
    out = jnp.dot(h2.astype(jnp.bfloat16), w3_ref[...],
                  preferred_element_type=jnp.float32)
    o_ref[...] = (out + b3_ref[...]).astype(o_ref.dtype)


def prepare_params(params):
    """One-time prep: transpose weights to [in, out], cast to bf16, reshape
    biases to [1, out] (kept f32). Call once, reuse across forward calls."""
    return {
        "w1t": params["w1"].T.astype(jnp.bfloat16),   # [784, 20]
        "w2t": params["w2"].T.astype(jnp.bfloat16),   # [20, 10]
        "w3t": params["w3"].T.astype(jnp.bfloat16),   # [10, 10]
        "b1": params["b1"].reshape(1, HIDDEN_SIZE).astype(jnp.float32),
        "b2": params["b2"].reshape(1, HIDDEN_SIZE2).astype(jnp.float32),
        "b3": params["b3"].reshape(1, NUM_CLASSES).astype(jnp.float32),
    }


def neural_net_forward(x, prepared, *, block_batch=DEFAULT_BLOCK_BATCH):
    """Forward pass of the 3-layer MLP inside a single pipelined Pallas kernel.

    x: [B, 784] float (any float dtype; cast to bf16 for the kernel)
    prepared: output of prepare_params(params)
    returns: [B, 10] float32
    """
    B = x.shape[0]
    # Tile size: multiple of 8, no bigger than needed.
    Bt = min(block_batch, max(8, ((B + 7) // 8) * 8))
    pad = (-B) % Bt
    xb = x.astype(jnp.bfloat16)
    if pad:
        xb = jnp.pad(xb, ((0, pad), (0, 0)))
    Bp = B + pad
    grid = (Bp // Bt,)

    in_specs = [
        pl.BlockSpec((Bt, INPUT_SIZE), lambda i: (i, 0)),            # x tile
        pl.BlockSpec((INPUT_SIZE, HIDDEN_SIZE), lambda i: (0, 0)),   # w1t
        pl.BlockSpec((1, HIDDEN_SIZE), lambda i: (0, 0)),            # b1
        pl.BlockSpec((HIDDEN_SIZE, HIDDEN_SIZE2), lambda i: (0, 0)),  # w2t
        pl.BlockSpec((1, HIDDEN_SIZE2), lambda i: (0, 0)),           # b2
        pl.BlockSpec((HIDDEN_SIZE2, NUM_CLASSES), lambda i: (0, 0)),  # w3t
        pl.BlockSpec((1, NUM_CLASSES), lambda i: (0, 0)),            # b3
    ]
    out_specs = pl.BlockSpec((Bt, NUM_CLASSES), lambda i: (i, 0))

    out = pl.pallas_call(
        mlp_kernel,
        out_shape=jax.ShapeDtypeStruct((Bp, NUM_CLASSES), jnp.float32),
        grid=grid,
        in_specs=in_specs,
        out_specs=out_specs,
        compiler_params=pltpu.CompilerParams(
            dimension_semantics=("parallel",)),
    )(xb, prepared["w1t"], prepared["b1"], prepared["w2t"], prepared["b2"],
      prepared["w3t"], prepared["b3"])
    return out[:B]


def init_params(key):
    """Deterministic parameter init matching nn.Linear shapes (torch layout)."""
    ks = jax.random.split(key, 6)

    def uni(k, shape, fan_in):
        bound = 1.0 / jnp.sqrt(fan_in)
        return jax.random.uniform(k, shape, jnp.float32, -bound, bound)

    return {
        "w1": uni(ks[0], (HIDDEN_SIZE, INPUT_SIZE), INPUT_SIZE),
        "b1": uni(ks[1], (HIDDEN_SIZE,), INPUT_SIZE),
        "w2": uni(ks[2], (HIDDEN_SIZE2, HIDDEN_SIZE), HIDDEN_SIZE),
        "b2": uni(ks[3], (HIDDEN_SIZE2,), HIDDEN_SIZE),
        "w3": uni(ks[4], (NUM_CLASSES, HIDDEN_SIZE2), HIDDEN_SIZE2),
        "b3": uni(ks[5], (NUM_CLASSES,), HIDDEN_SIZE2),
    }


def reference_forward(x, p):
    """Pure-JAX reference mirroring the kernel's bf16-operand / f32-accumulate
    numerics."""
    bf = lambda a: a.astype(jnp.bfloat16).astype(jnp.float32)
    h1 = jnp.maximum(bf(x) @ bf(p["w1"].T) + p["b1"], 0.0)
    h2 = jnp.maximum(bf(h1) @ bf(p["w2"].T) + p["b2"], 0.0)
    return bf(h2) @ bf(p["w3"].T) + p["b3"]


if __name__ == "__main__":
    key = jax.random.PRNGKey(0)
    k_x, k_p = jax.random.split(key)
    params = init_params(k_p)
    prepared = prepare_params(params)

    # Small single-tile case (batch=8).
    x_small = jax.random.normal(k_x, (8, INPUT_SIZE), dtype=jnp.float32)
    out_small = jax.block_until_ready(neural_net_forward(x_small, prepared))
    ref_small = reference_forward(x_small, params)
    assert out_small.shape == (8, NUM_CLASSES)
    assert jnp.allclose(out_small, ref_small, atol=1e-2, rtol=1e-2)

    # Multi-tile case to exercise the batch grid / pipelining (3 grid steps).
    x_multi = jax.random.normal(k_x, (24, INPUT_SIZE), dtype=jnp.float32)
    out_multi = jax.block_until_ready(
        neural_net_forward(x_multi, prepared, block_batch=8))
    ref_multi = reference_forward(x_multi, params)
    assert out_multi.shape == (24, NUM_CLASSES)
    assert jnp.allclose(out_multi, ref_multi, atol=1e-2, rtol=1e-2)

    print("KERNEL_OK")
</pallas_src>

<mosaic_0001>
module attributes {stable_mosaic.version = 11 : i64} {
  func.func @mlp_kernel(%arg0: i32, %arg1: memref<8x784xbf16, #tpu.memory_space<vmem>>, %arg2: memref<784x20xbf16, #tpu.memory_space<vmem>>, %arg3: memref<1x20xf32, #tpu.memory_space<vmem>>, %arg4: memref<20x10xbf16, #tpu.memory_space<vmem>>, %arg5: memref<1x10xf32, #tpu.memory_space<vmem>>, %arg6: memref<10x10xbf16, #tpu.memory_space<vmem>>, %arg7: memref<1x10xf32, #tpu.memory_space<vmem>>, %arg8: memref<8x10xf32, #tpu.memory_space<vmem>>) attributes {dimension_semantics = [#tpu.dimension_semantics<parallel>], iteration_bounds = array<i64: 1>, scalar_prefetch = 0 : i64, scratch_operands = 0 : i64, tpu.core_type = #tpu.core_type<tc>, window_params = [{transform_indices = @transform_0, window_bounds = array<i64: 8, 784>}, {pipeline_mode = #tpu.pipeline_mode<synchronous>, transform_indices = @transform_1, window_bounds = array<i64: 784, 20>}, {pipeline_mode = #tpu.pipeline_mode<synchronous>, transform_indices = @transform_2, window_bounds = array<i64: 1, 20>}, {pipeline_mode = #tpu.pipeline_mode<synchronous>, transform_indices = @transform_3, window_bounds = array<i64: 20, 10>}, {pipeline_mode = #tpu.pipeline_mode<synchronous>, transform_indices = @transform_4, window_bounds = array<i64: 1, 10>}, {pipeline_mode = #tpu.pipeline_mode<synchronous>, transform_indices = @transform_5, window_bounds = array<i64: 10, 10>}, {pipeline_mode = #tpu.pipeline_mode<synchronous>, transform_indices = @transform_6, window_bounds = array<i64: 1, 10>}, {transform_indices = @transform_7, window_bounds = array<i64: 8, 10>}]} {
    %c0 = arith.constant 0 : index
    %c0_0 = arith.constant 0 : index
    %0 = vector.load %arg1[%c0, %c0_0] : memref<8x784xbf16, #tpu.memory_space<vmem>>, vector<8x784xbf16>
    %c0_1 = arith.constant 0 : index
    %c0_2 = arith.constant 0 : index
    %1 = vector.load %arg2[%c0_1, %c0_2] : memref<784x20xbf16, #tpu.memory_space<vmem>>, vector<784x20xbf16>
    %cst = arith.constant dense<0.000000e+00> : vector<8x20xf32>
    %2 = tpu.matmul %0, %1, %cst {dimension_numbers = #tpu.dot_dimension_numbers<[1], [0], [0], [1], [0, 0, 1, 1], [], []>} : vector<8x784xbf16>, vector<784x20xbf16>, vector<8x20xf32> -> vector<8x20xf32>
    %c0_3 = arith.constant 0 : index
    %c0_4 = arith.constant 0 : index
    %3 = vector.load %arg3[%c0_3, %c0_4] : memref<1x20xf32, #tpu.memory_space<vmem>>, vector<1x20xf32>
    %4 = vector.broadcast %3 : vector<1x20xf32> to vector<8x20xf32>
    %5 = arith.addf %2, %4 : vector<8x20xf32>
    %cst_5 = arith.constant 0.000000e+00 : f32
    %6 = vector.broadcast %cst_5 : f32 to vector<8x20xf32>
    %7 = arith.maximumf %5, %6 : vector<8x20xf32>
    %8 = arith.truncf %7 : vector<8x20xf32> to vector<8x20xbf16>
    %c0_6 = arith.constant 0 : index
    %c0_7 = arith.constant 0 : index
    %9 = vector.load %arg4[%c0_6, %c0_7] : memref<20x10xbf16, #tpu.memory_space<vmem>>, vector<20x10xbf16>
    %cst_8 = arith.constant dense<0.000000e+00> : vector<8x10xf32>
    %10 = tpu.matmul %8, %9, %cst_8 {dimension_numbers = #tpu.dot_dimension_numbers<[1], [0], [0], [1], [0, 0, 1, 1], [], []>} : vector<8x20xbf16>, vector<20x10xbf16>, vector<8x10xf32> -> vector<8x10xf32>
    %c0_9 = arith.constant 0 : index
    %c0_10 = arith.constant 0 : index
    %11 = vector.load %arg5[%c0_9, %c0_10] : memref<1x10xf32, #tpu.memory_space<vmem>>, vector<1x10xf32>
    %12 = vector.broadcast %11 : vector<1x10xf32> to vector<8x10xf32>
    %13 = arith.addf %10, %12 : vector<8x10xf32>
    %cst_11 = arith.constant 0.000000e+00 : f32
    %14 = vector.broadcast %cst_11 : f32 to vector<8x10xf32>
    %15 = arith.maximumf %13, %14 : vector<8x10xf32>
    %16 = arith.truncf %15 : vector<8x10xf32> to vector<8x10xbf16>
    %c0_12 = arith.constant 0 : index
    %c0_13 = arith.constant 0 : index
    %17 = vector.load %arg6[%c0_12, %c0_13] : memref<10x10xbf16, #tpu.memory_space<vmem>>, vector<10x10xbf16>
    %cst_14 = arith.constant dense<0.000000e+00> : vector<8x10xf32>
    %18 = tpu.matmul %16, %17, %cst_14 {dimension_numbers = #tpu.dot_dimension_numbers<[1], [0], [0], [1], [0, 0, 1, 1], [], []>} : vector<8x10xbf16>, vector<10x10xbf16>, vector<8x10xf32> -> vector<8x10xf32>
    %c0_15 = arith.constant 0 : index
    %c0_16 = arith.constant 0 : index
    %19 = vector.load %arg7[%c0_15, %c0_16] : memref<1x10xf32, #tpu.memory_space<vmem>>, vector<1x10xf32>
    %20 = vector.broadcast %19 : vector<1x10xf32> to vector<8x10xf32>
    %21 = arith.addf %18, %20 : vector<8x10xf32>
    %c0_17 = arith.constant 0 : index
    %c0_18 = arith.constant 0 : index
    %22 = vector.load %arg8[%c0_17, %c0_18] : memref<8x10xf32, #tpu.memory_space<vmem>>, vector<8x10xf32>
    tpu.vector_store %arg8[%c0_17, %c0_18], %21 {strides = array<i32>} : memref<8x10xf32, #tpu.memory_space<vmem>>, vector<8x10xf32>,
    return
  }
  func.func @transform_0(%arg0: i32) -> (i32, i32) {
    %c0_i32 = arith.constant 0 : i32
    %c0_i32_0 = arith.constant 0 : i32
    return %arg0, %c0_i32 : i32, i32
  }
  func.func @transform_1(%arg0: i32) -> (i32, i32) {
    %c0_i32 = arith.constant 0 : i32
    %c0_i32_0 = arith.constant 0 : i32
    %c0_i32_1 = arith.constant 0 : i32
    return %c0_i32, %c0_i32_0 : i32, i32
  }
  func.func @transform_2(%arg0: i32) -> (i32, i32) {
    %c0_i32 = arith.constant 0 : i32
    %c0_i32_0 = arith.constant 0 : i32
    %c0_i32_1 = arith.constant 0 : i32
    return %c0_i32, %c0_i32_0 : i32, i32
  }
  func.func @transform_3(%arg0: i32) -> (i32, i32) {
    %c0_i32 = arith.constant 0 : i32
    %c0_i32_0 = arith.constant 0 : i32
    %c0_i32_1 = arith.constant 0 : i32
    return %c0_i32, %c0_i32_0 : i32, i32
  }
  func.func @transform_4(%arg0: i32) -> (i32, i32) {
    %c0_i32 = arith.constant 0 : i32
    %c0_i32_0 = arith.constant 0 : i32
    %c0_i32_1 = arith.constant 0 : i32
    return %c0_i32, %c0_i32_0 : i32, i32
  }
  func.func @transform_5(%arg0: i32) -> (i32, i32) {
    %c0_i32 = arith.constant 0 : i32
    %c0_i32_0 = arith.constant 0 : i32
    %c0_i32_1 = arith.constant 0 : i32
    return %c0_i32, %c0_i32_0 : i32, i32
  }
  func.func @transform_6(%arg0: i32) -> (i32, i32) {
    %c0_i32 = arith.constant 0 : i32
    %c0_i32_0 = arith.constant 0 : i32
    %c0_i32_1 = arith.constant 0 : i32
    return %c0_i32, %c0_i32_0 : i32, i32
  }
  func.func @transform_7(%arg0: i32) -> (i32, i32) {
    %c0_i32 = arith.constant 0 : i32
    %c0_i32_0 = arith.constant 0 : i32
    return %arg0, %c0_i32 : i32, i32
  }
}

</mosaic_0001>

<bundles_post_ra>
// kernel: tpu_custom_call.1
= control target key start
LH: loop header
LB: loop body
LE: loop exit
PB: predicated region body
PF: predicated region fallthrough
CT: control target
= control target key end

     0   :  { %s1149_s0 = inlined_call_operand.vmem [shape: bf16[8,784], index: 0, kind: input, shape index: {}]   ;;  %s1150_s1 = inlined_call_operand.vmem [shape: bf16[784,20], index: 1, kind: input, shape index: {}]   ;;  %s1151_s2 = inlined_call_operand.vmem [shape: f32[1,20], index: 2, kind: input, shape index: {}]   ;;  %s1152_s3 = inlined_call_operand.vmem [shape: bf16[20,10], index: 3, kind: input, shape index: {}]   ;;  %s1153_s4 = inlined_call_operand.vmem [shape: f32[1,10], index: 4, kind: input, shape index: {}]   ;;  %s1154_s5 = inlined_call_operand.vmem [shape: bf16[10,10], index: 5, kind: input, shape index: {}]   ;;  %s1155_s6 = inlined_call_operand.vmem [shape: f32[1,10], index: 6, kind: input, shape index: {}]   ;;  %s1156_s7 = inlined_call_operand.hbm [shape: f32[8,10], index: 7, kind: output, shape index: {}]  }
   0x1   :  { %v851_v0 = vld [vmem:[%s1150_s1 + $0x38] sm:$0xff]  ;;  %v850_v3 = vld [vmem:[%s1150_s1 + $0x30] sm:$0xff]  ;;  %v849_v8 = vld [vmem:[%s1150_s1 + $0x28] sm:$0xff] }
   0x2   :  { %v859_v1 = vld [vmem:[%s1150_s1 + $0x78] sm:$0xff]  ;;  %456 = vmatpush.bf16.msra.mxu0 %v851_v0  ;;  %v858_v4 = vld [vmem:[%s1150_s1 + $0x70] sm:$0xff]  ;;  %v857_v9 = vld [vmem:[%s1150_s1 + $0x68] sm:$0xff] }
   0x3   :  { %v867_v2 = vld [vmem:[%s1150_s1 + $0xb8] sm:$0xff]  ;;  %469 = vmatpush.bf16.msra.mxu1 %v859_v1  ;;  %v866_v5 = vld [vmem:[%s1150_s1 + $0xb0] sm:$0xff]  ;;  %v865_v10 = vld [vmem:[%s1150_s1 + $0xa8] sm:$0xff] }
   0x4   :  { %482 = vmatpush.bf16.msra.mxu2 %v867_v2  ;;  %v875_v6 = vld [vmem:[%s1150_s1 + $0xf8] sm:$0xff]  ;;  %v874_v7 = vld [vmem:[%s1150_s1 + $0xf0] sm:$0xff]  ;;  %v873_v11 = vld [vmem:[%s1150_s1 + $0xe8] sm:$0xff] }
   0x5   :  { %495 = vmatpush.bf16.msra.mxu3 %v875_v6  ;;  %v848_v12 = vld [vmem:[%s1150_s1 + $0x20] sm:$0xff]  ;;  %v847_v16 = vld [vmem:[%s1150_s1 + $0x18] sm:$0xff] }
   0x6   :  { %457 = vmatpush.bf16.msra.mxu0 %v850_v3  ;;  %v856_v13 = vld [vmem:[%s1150_s1 + $0x60] sm:$0xff]  ;;  %v855_v17 = vld [vmem:[%s1150_s1 + $0x58] sm:$0xff] }
   0x7   :  { %470 = vmatpush.bf16.msra.mxu1 %v858_v4  ;;  %v864_v14 = vld [vmem:[%s1150_s1 + $0xa0] sm:$0xff]  ;;  %v863_v18 = vld [vmem:[%s1150_s1 + $0x98] sm:$0xff] }
   0x8   :  { %483 = vmatpush.bf16.msra.mxu2 %v866_v5  ;;  %v872_v15 = vld [vmem:[%s1150_s1 + $0xe0] sm:$0xff] }
   0x9   :  { %496 = vmatpush.bf16.msra.mxu3 %v874_v7 }
   0xa   :  { %458 = vmatpush.bf16.msra.mxu0 %v849_v8 }
   0xb   :  { %471 = vmatpush.bf16.msra.mxu1 %v857_v9 }
   0xc   :  { %484 = vmatpush.bf16.msra.mxu2 %v865_v10 }
   0xd   :  { %497 = vmatpush.bf16.msra.mxu3 %v873_v11 }
   0xe   :  { %459 = vmatpush.bf16.msra.mxu0 %v848_v12 }
   0xf   :  { %472 = vmatpush.bf16.msra.mxu1 %v856_v13 }
  0x10   :  { %485 = vmatpush.bf16.msra.mxu2 %v864_v14 }
  0x11   :  { %12 = vsyncpa [#allocation3], 0  ;;  %498 = vmatpush.bf16.msra.mxu3 %v872_v15  ;;  %v871_v19 = vld [vmem:[%s1150_s1 + $0xd8] sm:$0xff]  ;;  %v846_v20 = vld [vmem:[%s1150_s1 + $0x10] sm:$0xff]  ;;  %vm452_vm0 = vcmask 130048   ;;  %vm569_vm1 = vcmask 1041408  }
  0x12   :  { %460 = vmatpush.bf16.msra.mxu0 %v847_v16  ;;  %v854_v21 = vld [vmem:[%s1150_s1 + $0x50] sm:$0xff]  ;;  %v845_v24 = vld [vmem:[%s1150_s1 + $0x8] sm:$0xff]  ;;  %v28_v26 = vld [vmem:[%s1149_s0] sm:$0xff]  ;;  %vm603_vm2 = vcmask 1044480   ;;  %vm565_vm3 = vcmask 162816   ;;  %vm599_vm4 = vcmask 80896  }
  0x13   :  { %473 = vmatpush.bf16.msra.mxu1 %v855_v17  ;;  %v862_v22 = vld [vmem:[%s1150_s1 + $0x90] sm:$0xff]  ;;  %v853_v25 = vld [vmem:[%s1150_s1 + $0x48] sm:$0xff]  ;;  %v138_v29 = vunpack.c.l.b16 %v28_v26  ;;  %v139_v31 = vunpack.c.h.b16 %v28_v26  ;;  %v844_v32 = vld [vmem:[%s1150_s1] sm:$0xff]  ;;  %s925_s24 = smov [#allocation2]   ;;  %s628_s28 = sshll.u32 %s1156_s7, 4  ;;  %s629_s28 = int_to_ptr.hbm [resolvable:$true] %s628_s28 }
  0x14   :  { %486 = vmatpush.bf16.msra.mxu2 %v863_v18  ;;  %v870_v23 = vld [vmem:[%s1150_s1 + $0xd0] sm:$0xff]  ;;  %v861_v27 = vld [vmem:[%s1150_s1 + $0x88] sm:$0xff]  ;;  %v852_v33 = vld [vmem:[%s1150_s1 + $0x40] sm:$0xff]  ;;  %s626_s25 = sshll.u32 %s925_s24, 4  ;;  %s627_s25 = int_to_ptr.vmem [resolvable:$true] %s626_s25 }
  0x15   :  { %499 = vmatpush.bf16.msra.mxu3 %v871_v19  ;;  %v29_v28 = vld [vmem:[%s1149_s0 + $0x8] sm:$0xff]  ;;  %v883_v34 = vld [vmem:[%s1150_s1 + $0x138] sm:$0xff]  ;;  %v860_v36 = vld [vmem:[%s1150_s1 + $0x80] sm:$0xff]  ;;  %v145_v38 = vpack.c.b16 %v138_v29, %v138_v29  ;;  %v146_v39 = vpack.c.b16 %v139_v31, %v139_v31 }
  0x16   :  { %461 = vmatpush.bf16.msra.mxu0 %v846_v20  ;;  %v869_v30 = vld [vmem:[%s1150_s1 + $0xc8] sm:$0xff]  ;;  %v891_v35 = vld [vmem:[%s1150_s1 + $0x178] sm:$0xff]  ;;  %v140_v37 = vunpack.c.l.b16 %v29_v28  ;;  %v141_v40 = vunpack.c.h.b16 %v29_v28  ;;  %v868_v41 = vld [vmem:[%s1150_s1 + $0xc0] sm:$0xff] }
  0x17   :  { %474 = vmatpush.bf16.msra.mxu1 %v854_v21  ;;  %v892_v42 = vld [vmem:[%s1150_s1 + $0x180] sm:$0xff]  ;;  %v882_v43 = vld [vmem:[%s1150_s1 + $0x130] sm:$0xff]  ;;  %v881_v47 = vld [vmem:[%s1150_s1 + $0x128] sm:$0xff] }
  0x18   :  { %487 = vmatpush.bf16.msra.mxu2 %v862_v22  ;;  %v890_v44 = vld [vmem:[%s1150_s1 + $0x170] sm:$0xff]  ;;  %v147_v45 = vpack.c.b16 %v140_v37, %v140_v37  ;;  %v148_v46 = vpack.c.b16 %v141_v40, %v141_v40  ;;  %v889_v48 = vld [vmem:[%s1150_s1 + $0x168] sm:$0xff]  ;;  %v880_v49 = vld [vmem:[%s1150_s1 + $0x120] sm:$0xff] }
  0x19   :  { %500 = vmatpush.bf16.msra.mxu3 %v870_v23  ;;  %v888_v50 = vld [vmem:[%s1150_s1 + $0x160] sm:$0xff]  ;;  %v31_v51 = vld [vmem:[%s1149_s0 + $0x18] sm:$0xf]  ;;  %v878_v55 = vld [vmem:[%s1150_s1 + $0x110] sm:$0xff] }
  0x1a   :  { %462 = vmatpush.bf16.msra.mxu0 %v845_v24  ;;  %v879_v52 = vld [vmem:[%s1150_s1 + $0x118] sm:$0xff]  ;;  %v144_v54 = vunpack.c.l.b16 %v31_v51  ;;  %v886_v56 = vld [vmem:[%s1150_s1 + $0x150] sm:$0xff]  ;;  %v877_v58 = vld [vmem:[%s1150_s1 + $0x108] sm:$0xff] }
  0x1b   :  { %475 = vmatpush.bf16.msra.mxu1 %v853_v25  ;;  %v887_v53 = vld [vmem:[%s1150_s1 + $0x158] sm:$0xff]  ;;  %v885_v59 = vld [vmem:[%s1150_s1 + $0x148] sm:$0xff]  ;;  %v30_v60 = vld [vmem:[%s1149_s0 + $0x10] sm:$0xff] }
  0x1c   :  { %488 = vmatpush.bf16.msra.mxu2 %v861_v27  ;;  %v151_v57 = vpack.c.b16 %v144_v54, %v144_v54  ;;  %v142_v61 = vunpack.c.l.b16 %v30_v60  ;;  %v143_v62 = vunpack.c.h.b16 %v30_v60  ;;  %v876_v63 = vld [vmem:[%s1150_s1 + $0x100] sm:$0xff]  ;;  %v551_v3 = vld [vmem:[%s1152_s3 + $0x8] sm:$0x3] }
  0x1d   :  { %501 = vmatpush.bf16.msra.mxu3 %v869_v30  ;;  %v884_v0 = vld [vmem:[%s1150_s1 + $0x140] sm:$0xff]  ;;  %v561_v4 = vunpack.c.l.b16 %v551_v3 }
  0x1e   :  { %463 = vmatpush.bf16.msra.mxu0 %v844_v32  ;;  %v149_v1 = vpack.c.b16 %v142_v61, %v142_v61  ;;  %v150_v2 = vpack.c.b16 %v143_v62, %v143_v62  ;;  %v893_v9 = vld [vmem:[%s1152_s3] sm:$0xff] }
  0x1f   :  { %476 = vmatpush.bf16.msra.mxu1 %v852_v33  ;;  %v563_v5 = vpack.c.b16 %v561_v4, %v561_v4  ;;  %v841_v12 = vld [vmem:[%s1154_s5] sm:$0xf]  ;;  %v894_v13 = vld [vmem:[%s1154_s5] sm:$0x10] }
  0x20   :  { %489 = vmatpush.bf16.msra.mxu2 %v860_v36  ;;  %v842_v15 = vor.u32 %v894_v13, %v841_v12  ;;  %v896_v18 = vld [vmem:[%s1151_s2] ss:$0 sm:$0xff] }
  0x21   :  { %464 = vmatmul.bf16.vlgmr.msra.gmra.mxu0 %v145_v38  ;;  %502 = vmatpush.bf16.msra.mxu3 %v868_v41  ;;  %v571_v6 = vsel %vm569_vm1, %v563_v5, 0  ;;  %v897_v36 = vld [vmem:[%s1153_s4] ss:$0 sm:$0xff] }
  0x22   :  { %508 = vmatpush.bf16.msrb.mxu0 %v883_v34  ;;  %477 = vmatmul.bf16.vlgmr.msra.gmra.mxu1 %v146_v39  ;;  %v605_v17 = vsel %vm603_vm2, %v842_v15, 0 }
  0x23   :  { %521 = vmatpush.bf16.msrb.mxu1 %v891_v35  ;;  %490 = vmatmul.bf16.vlgmr.msra.gmra.mxu2 %v147_v45 }
  0x24   :  { %541 = vmatpush.bf16.msrb.mxu2 %v892_v42  ;;  %503 = vmatmul.bf16.vlgmr.msra.gmra.mxu3 %v148_v46  ;;  %v898_v42 = vld [vmem:[%s1155_s6] ss:$0 sm:$0xff] }
  0x25   :  { %579 = vmatpush.bf16.msrb.mxu3 %v571_v6 }
  0x26   :  { %509 = vmatpush.bf16.msrb.mxu0 %v882_v43 }
  0x27   :  { %522 = vmatpush.bf16.msrb.mxu1 %v890_v44 }
  0x28   :  { %614 = vmatpush.bf16.msra.mxu2 %v605_v17 }
  0x29   :  { %580 = vmatpush.bf16.msrb.mxu3 %v893_v9 }
  0x2a   :  { %510 = vmatpush.bf16.msrb.mxu0 %v881_v47 }
  0x2b   :  { %523 = vmatpush.bf16.msrb.mxu1 %v889_v48 }
  0x2e   :  { %511 = vmatpush.bf16.msrb.mxu0 %v880_v49 }
  0x2f   :  { %524 = vmatpush.bf16.msrb.mxu1 %v888_v50 }
  0x32   :  { %512 = vmatpush.bf16.msrb.mxu0 %v879_v52 }
  0x33   :  { %525 = vmatpush.bf16.msrb.mxu1 %v887_v53  ;;  %833 = vmatmul.msk.bf16.vlgmr.msrb.gmra.mxu2 %vm452_vm0, %v151_v57 }
  0x36   :  { %513 = vmatpush.bf16.msrb.mxu0 %v878_v55 }
  0x37   :  { %526 = vmatpush.bf16.msrb.mxu1 %v886_v56 }
  0x3a   :  { %514 = vmatpush.bf16.msrb.mxu0 %v877_v58 }
  0x3b   :  { %527 = vmatpush.bf16.msrb.mxu1 %v885_v59 }
  0x3e   :  { %515 = vmatpush.bf16.msrb.mxu0 %v876_v63 }
  0x3f   :  { %528 = vmatpush.bf16.msrb.mxu1 %v884_v0 }
  0x41   :  { %516 = vmatmul.bf16.vlgmr.msrb.gmra.mxu0 %v149_v1 }
  0x42   :  { %529 = vmatmul.bf16.vlgmr.msrb.gmra.mxu1 %v150_v2 }
  0x9e   :  { %v465_v7 = vpop.f32.mrf.mxu0 }
  0x9f   :  { %v478_v8 = vpop.f32.mrf.mxu1  ;;  %v466_v19 = vadd.f32 %v896_v18, %v465_v7 }
  0xa1   :  { %v479_v22 = vadd.f32 %v478_v8, %v466_v19 }
  0xa6   :  { %v467_v10 = vpop.f32.mrf.mxu0  ;;  %v491_v14 = vpop.f32.mrf.mxu2 }
  0xa7   :  { %v480_v11 = vpop.f32.mrf.mxu1  ;;  %v504_v16 = vpop.f32.mrf.mxu3  ;;  %v492_v23 = vadd.f32 %v491_v14, %v479_v22 }
  0xa9   :  { %v505_v25 = vadd.f32 %v504_v16, %v492_v23 }
  0xae   :  { %v493_v20 = vpop.f32.mrf.mxu2 }
  0xaf   :  { %v506_v21 = vpop.f32.mrf.mxu3 }
  0xb6   :  { %v543_v24 = vpop.f32.mrf.mxu2 }
  0xbe   :  { %v517_v26 = vpop.f32.mrf.mxu0  ;;  %v545_v30 = vpop.f32.mrf.mxu2 }
  0xbf   :  { %v530_v27 = vpop.f32.mrf.mxu1  ;;  %v518_v28 = vadd.f32 %v517_v26, %v505_v25 }
  0xc1   :  { %v531_v29 = vadd.f32 %v530_v27, %v518_v28 }
  0xc3   :  { %v544_v31 = vadd.f32 %v543_v24, %v531_v29 }
  0xc5   :  { %v547_v32 = vmax.f32 %v544_v31, 0.0 }
  0xc6   :  { %v519_v33 = vpop.f32.mrf.mxu0 }
  0xc7   :  { %v532_v34 = vpop.f32.mrf.mxu1  ;;  %v548_v35 = vpack.c.bf16 %v547_v32, %v547_v32 }
  0xc9   :  { %838 = vmatmul.msk.bf16.vlgmr.msrb.gmra.mxu3 %vm565_vm3, %v548_v35 }
 0x14c   :  { %v582_v37 = vpop.f32.mrf.mxu3 }
 0x14d   :  { %v583_v38 = vadd.f32 %v897_v36, %v582_v37 }
 0x14f   :  { %v586_v39 = vmax.f32 %v583_v38, 0.0 }
 0x151   :  { %v587_v40 = vpack.c.bf16 %v586_v39, %v586_v39 }
 0x153   :  { %843 = vmatmul.msk.bf16.vlgmr.msra.gmra.mxu2 %vm599_vm4, %v587_v40 }
 0x154   :  { %v584_v41 = vpop.f32.mrf.mxu3 }
 0x1d6   :  { %v616_v43 = vpop.f32.mrf.mxu2 }
 0x1d7   :  { %v617_v44 = vadd.f32 %v898_v42, %v616_v43 }
 0x1d9   :  { %620 = vst.msk [vmem:[#allocation2] sm:$0xff] %vm599_vm4, %v617_v44 }
 0x1da   :  { %631 = dma.vmem_to_hbm [thread:$0]  %s627_s25, 128, %s629_s28, [#allocation3]  }
 0x1de   :  { %v618_v45 = vpop.f32.mrf.mxu2 }
 0x1df   :  { %923 = dma.done.wait [#allocation3], 128  }
 0x1e0   :  { %924 = vsyncadd [#allocation3], 4294967168 }
 0x1e1   :  { %636 = vsyncpa [#allocation3], 1 }

</bundles_post_ra>
